<compile_context>
chip_gen: v6e
topology: v6e:2x2x1
jax: 0.10.0
libtpu: 0.0.40
codegen_flags: <defaults>
</compile_context>

<pallas_src>
import numpy as np
import jax
import jax.numpy as jnp
from jax import lax
from jax.experimental import pallas as pl
from jax.experimental.pallas import tpu as pltpu


def _round_up(x: int, m: int) -> int:
    return ((x + m - 1) // m) * m


# ---------------------------------------------------------------------------
# Pallas kernel: fused  relu((mask @ embed) @ W^T + bias)
# grid = (B_tiles, U_tiles); U is the reduction axis (last, "arbitrary").
# ---------------------------------------------------------------------------
def msan_kernel(mask_ref, embed_ref, w_ref, b_ref, out_ref, acc_ref):
    k = pl.program_id(1)

    @pl.when(k == 0)
    def _init():
        acc_ref[...] = jnp.zeros_like(acc_ref)

    # Partial aggregation: [tm, tk](bf16) @ [tk, Dinp](bf16) -> f32 accumulate.
    acc_ref[...] += jnp.dot(mask_ref[...], embed_ref[...],
                            preferred_element_type=jnp.float32)

    @pl.when(k == pl.num_programs(1) - 1)
    def _epilogue():
        # Second matmul: contract agg dim 1 with weight dim 1 (weight stays
        # [Dout, Din] — no transpose), keeping Dout on the lane axis.
        agg = acc_ref[...].astype(jnp.bfloat16)
        z = lax.dot_general(agg, w_ref[...],
                            dimension_numbers=(((1,), (1,)), ((), ())),
                            preferred_element_type=jnp.float32)
        out_ref[...] = jnp.maximum(z + b_ref[...], 0.0)


def msan_forward_pallas(mask, embed, weight, bias):
    """mask:[B,U] f32, embed:[U,Din] f32, weight:[Dout,Din] f32, bias:[Dout] f32."""
    B, U = mask.shape
    Din = embed.shape[1]
    Dout = weight.shape[0]

    # Lane-dense padding: 128 along the lane axis, 16 sublanes (bf16 packing).
    Bp = _round_up(B, 16)
    Up = _round_up(U, 128)
    Dinp = _round_up(Din, 128)
    Doutp = _round_up(Dout, 128)

    # Tile sizes, capped so double-buffered tiles stay far below v7x VMEM.
    tm = Bp if Bp <= 256 else 256
    Bp = _round_up(Bp, tm)
    tk = Up if Up <= 512 else 512
    Up = _round_up(Up, tk)

    def pad2(x, rows, cols, dtype):
        x = x.astype(dtype)
        return jnp.pad(x, ((0, rows - x.shape[0]), (0, cols - x.shape[1])))

    mask_p = pad2(mask, Bp, Up, jnp.bfloat16)
    embed_p = pad2(embed, Up, Dinp, jnp.bfloat16)
    w_p = pad2(weight, Doutp, Dinp, jnp.bfloat16)            # kept [Dout, Din]
    b_p = pad2(bias.reshape(1, Dout), 1, Doutp, jnp.float32)

    grid = (Bp // tm, Up // tk)

    out_p = pl.pallas_call(
        msan_kernel,
        out_shape=jax.ShapeDtypeStruct((Bp, Doutp), jnp.float32),
        grid_spec=pltpu.PrefetchScalarGridSpec(
            num_scalar_prefetch=0,
            grid=grid,
            in_specs=[
                pl.BlockSpec((tm, tk), lambda i, k: (i, k)),        # mask tile
                pl.BlockSpec((tk, Dinp), lambda i, k: (k, 0)),      # embed tile
                pl.BlockSpec((Doutp, Dinp), lambda i, k: (0, 0)),   # weight (resident)
                pl.BlockSpec((1, Doutp), lambda i, k: (0, 0)),      # bias (resident)
            ],
            out_specs=pl.BlockSpec((tm, Doutp), lambda i, k: (i, 0)),
            scratch_shapes=[pltpu.VMEM((tm, Dinp), jnp.float32)],
        ),
        compiler_params=pltpu.CompilerParams(
            dimension_semantics=("parallel", "arbitrary"),
            vmem_limit_bytes=32 * 1024 * 1024,
        ),
    )(mask_p, embed_p, w_p, b_p)

    return out_p[:B, :Dout]


# ---------------------------------------------------------------------------
# Host-side glue: exact replica of MSAN._get_unique_neighs_list / aggregate
# index bookkeeping (Python sets / dicts — host-only, feeds the kernel).
# ---------------------------------------------------------------------------
def build_mask_and_embed(nodes_batch, adj_lists, reweighted, raw_features,
                         self_loop=False):
    nodes_neighbors = [set(adj_lists[int(n)]) for n in nodes_batch]
    nodes_neighbors = [nbrs | {nodes_batch[i]}
                       for i, nbrs in enumerate(nodes_neighbors)]
    unique_nodes_list = list(set.union(*nodes_neighbors))
    node2index = {n: i for i, n in enumerate(unique_nodes_list)}

    # indicator assertion from the module
    assert all(nodes_batch[i] in nodes_neighbors[i]
               for i in range(len(nodes_neighbors)))

    if not self_loop:
        nodes_neighbors = [nodes_neighbors[i] - {nodes_batch[i]}
                           for i in range(len(nodes_neighbors))]

    embed_matrix = raw_features[np.asarray(unique_nodes_list, dtype=np.int64)]

    mask = np.zeros((len(nodes_neighbors), len(node2index)), dtype=np.float32)
    for i, nbrs in enumerate(nodes_neighbors):
        for n in nbrs:
            mask[i, node2index[n]] = reweighted[nodes_batch[i], n]
    return mask, embed_matrix


# ---------------------------------------------------------------------------
# Driver
# ---------------------------------------------------------------------------
if __name__ == "__main__":
    key = jax.random.PRNGKey(0)
    k_feat, k_w, k_rw = jax.random.split(key, 3)

    NUM_NODES = 16          # nodes in the graph
    INPUT_DIM = 32          # raw feature dim (== Linear input_dim)
    OUT_DIM = 16            # Linear out_dim
    BATCH = 8               # nodes_batch size

    # deterministic synthetic graph: node i -> {i-1, i+1, i+3} (mod N)
    adj_lists = {i: {(i - 1) % NUM_NODES, (i + 1) % NUM_NODES,
                     (i + 3) % NUM_NODES}
                 for i in range(NUM_NODES)}

    # raw node features and MSAN re-weighting matrix
    raw_features = np.asarray(
        jax.random.normal(k_feat, (NUM_NODES, INPUT_DIM), dtype=jnp.float32))
    reweighted = np.asarray(
        jax.random.uniform(k_rw, (NUM_NODES, NUM_NODES), dtype=jnp.float32))

    # Linear params: kaiming-uniform weight, zero bias (deterministic)
    bound = np.sqrt(6.0 / INPUT_DIM)
    weight = jax.random.uniform(k_w, (OUT_DIM, INPUT_DIM),
                                dtype=jnp.float32, minval=-bound, maxval=bound)
    bias = jnp.zeros((OUT_DIM,), dtype=jnp.float32)

    # batch of node ids
    nodes_batch = [1, 3, 5, 7, 9, 11, 13, 15]

    # host-side aggregation bookkeeping (mirrors MSAN.aggregate index math)
    mask_np, embed_np = build_mask_and_embed(
        nodes_batch, adj_lists, reweighted, raw_features, self_loop=False)

    mask = jnp.asarray(mask_np)
    embed = jnp.asarray(embed_np)

    out = msan_forward_pallas(mask, embed, weight, bias)
    out = jax.block_until_ready(out)

    # cross-check against a plain-JAX reference with the same bf16-operand /
    # f32-accumulate numerics as the kernel
    mask_bf = mask.astype(jnp.bfloat16)
    embed_bf = embed.astype(jnp.bfloat16)
    w_bf = weight.astype(jnp.bfloat16)
    agg_ref = jnp.dot(mask_bf, embed_bf, preferred_element_type=jnp.float32)
    ref = jnp.maximum(
        jnp.dot(agg_ref.astype(jnp.bfloat16), w_bf.T,
                preferred_element_type=jnp.float32) + bias, 0.0)
    np.testing.assert_allclose(np.asarray(out), np.asarray(ref),
                               rtol=2e-2, atol=2e-2)

    # TODO(synk): adjacency-set union / node re-indexing is inherently
    # host-side Python; only the dense mask values feed the kernel.
    print("KERNEL_OK")
</pallas_src>

<mosaic_0001>
module attributes {stable_mosaic.version = 11 : i64} {
  func.func @msan_kernel(%arg0: i32, %arg1: i32, %arg2: memref<16x128xbf16, #tpu.memory_space<vmem>>, %arg3: memref<128x128xbf16, #tpu.memory_space<vmem>>, %arg4: memref<128x128xbf16, #tpu.memory_space<vmem>>, %arg5: memref<1x128xf32, #tpu.memory_space<vmem>>, %arg6: memref<16x128xf32, #tpu.memory_space<vmem>>, %arg7: memref<16x128xf32, #tpu.memory_space<vmem>>) attributes {dimension_semantics = [#tpu.dimension_semantics<parallel>, #tpu.dimension_semantics<arbitrary>], iteration_bounds = array<i64: 1, 1>, scalar_prefetch = 0 : i64, scratch_operands = 1 : i64, tpu.core_type = #tpu.core_type<tc>, window_params = [{transform_indices = @transform_0, window_bounds = array<i64: 16, 128>}, {transform_indices = @transform_1, window_bounds = array<i64: 128, 128>}, {pipeline_mode = #tpu.pipeline_mode<synchronous>, transform_indices = @transform_2, window_bounds = array<i64: 128, 128>}, {pipeline_mode = #tpu.pipeline_mode<synchronous>, transform_indices = @transform_3, window_bounds = array<i64: 1, 128>}, {transform_indices = @transform_4, window_bounds = array<i64: 16, 128>}]} {
    %c0_i32 = arith.constant 0 : i32
    %0 = arith.cmpi eq, %arg1, %c0_i32 : i32
    %1 = arith.extui %0 : i1 to i32
    %c0_i32_0 = arith.constant 0 : i32
    %2 = arith.cmpi ne, %1, %c0_i32_0 : i32
    scf.if %2 {
      %cst_10 = arith.constant 0.000000e+00 : f32
      %12 = vector.broadcast %cst_10 : f32 to vector<16x128xf32>
      %c0_11 = arith.constant 0 : index
      %c0_12 = arith.constant 0 : index
      %13 = vector.load %arg7[%c0_11, %c0_12] : memref<16x128xf32, #tpu.memory_space<vmem>>, vector<16x128xf32>
      tpu.vector_store %arg7[%c0_11, %c0_12], %12 {strides = array<i32>} : memref<16x128xf32, #tpu.memory_space<vmem>>, vector<16x128xf32>,
    } else {
    }
    %c0 = arith.constant 0 : index
    %c0_1 = arith.constant 0 : index
    %3 = vector.load %arg7[%c0, %c0_1] : memref<16x128xf32, #tpu.memory_space<vmem>>, vector<16x128xf32>
    %c0_2 = arith.constant 0 : index
    %c0_3 = arith.constant 0 : index
    %4 = vector.load %arg2[%c0_2, %c0_3] : memref<16x128xbf16, #tpu.memory_space<vmem>>, vector<16x128xbf16>
    %c0_4 = arith.constant 0 : index
    %c0_5 = arith.constant 0 : index
    %5 = vector.load %arg3[%c0_4, %c0_5] : memref<128x128xbf16, #tpu.memory_space<vmem>>, vector<128x128xbf16>
    %cst = arith.constant dense<0.000000e+00> : vector<16x128xf32>
    %6 = tpu.matmul %4, %5, %cst {dimension_numbers = #tpu.dot_dimension_numbers<[1], [0], [0], [1], [0, 0, 1, 1], [], []>} : vector<16x128xbf16>, vector<128x128xbf16>, vector<16x128xf32> -> vector<16x128xf32>
    %7 = arith.addf %3, %6 : vector<16x128xf32>
    %c0_6 = arith.constant 0 : index
    %c0_7 = arith.constant 0 : index
    %8 = vector.load %arg7[%c0_6, %c0_7] : memref<16x128xf32, #tpu.memory_space<vmem>>, vector<16x128xf32>
    tpu.vector_store %arg7[%c0_6, %c0_7], %7 {strides = array<i32>} : memref<16x128xf32, #tpu.memory_space<vmem>>, vector<16x128xf32>,
    %c0_i32_8 = arith.constant 0 : i32
    %9 = arith.cmpi eq, %arg1, %c0_i32_8 : i32
    %10 = arith.extui %9 : i1 to i32
    %c0_i32_9 = arith.constant 0 : i32
    %11 = arith.cmpi ne, %10, %c0_i32_9 : i32
    scf.if %11 {
      %c0_10 = arith.constant 0 : index
      %c0_11 = arith.constant 0 : index
      %12 = vector.load %arg7[%c0_10, %c0_11] : memref<16x128xf32, #tpu.memory_space<vmem>>, vector<16x128xf32>
      %13 = arith.truncf %12 : vector<16x128xf32> to vector<16x128xbf16>
      %c0_12 = arith.constant 0 : index
      %c0_13 = arith.constant 0 : index
      %14 = vector.load %arg4[%c0_12, %c0_13] : memref<128x128xbf16, #tpu.memory_space<vmem>>, vector<128x128xbf16>
      %cst_14 = arith.constant dense<0.000000e+00> : vector<16x128xf32>
      %15 = tpu.matmul %13, %14, %cst_14 {dimension_numbers = #tpu.dot_dimension_numbers<[1], [1], [0], [0], [0, 0, 1, 0], [], []>} : vector<16x128xbf16>, vector<128x128xbf16>, vector<16x128xf32> -> vector<16x128xf32>
      %c0_15 = arith.constant 0 : index
      %c0_16 = arith.constant 0 : index
      %16 = vector.load %arg5[%c0_15, %c0_16] : memref<1x128xf32, #tpu.memory_space<vmem>>, vector<1x128xf32>
      %17 = vector.broadcast %16 : vector<1x128xf32> to vector<16x128xf32>
      %18 = arith.addf %15, %17 : vector<16x128xf32>
      %cst_17 = arith.constant 0.000000e+00 : f32
      %19 = vector.broadcast %cst_17 : f32 to vector<16x128xf32>
      %20 = arith.maximumf %18, %19 : vector<16x128xf32>
      %c0_18 = arith.constant 0 : index
      %c0_19 = arith.constant 0 : index
      %21 = vector.load %arg6[%c0_18, %c0_19] : memref<16x128xf32, #tpu.memory_space<vmem>>, vector<16x128xf32>
      tpu.vector_store %arg6[%c0_18, %c0_19], %20 {strides = array<i32>} : memref<16x128xf32, #tpu.memory_space<vmem>>, vector<16x128xf32>,
    } else {
    }
    return
  }
  func.func @transform_0(%arg0: i32, %arg1: i32) -> (i32, i32) {
    %c0_i32 = arith.constant 0 : i32
    return %arg0, %arg1 : i32, i32
  }
  func.func @transform_1(%arg0: i32, %arg1: i32) -> (i32, i32) {
    %c0_i32 = arith.constant 0 : i32
    %c0_i32_0 = arith.constant 0 : i32
    return %arg1, %c0_i32 : i32, i32
  }
  func.func @transform_2(%arg0: i32, %arg1: i32) -> (i32, i32) {
    %c0_i32 = arith.constant 0 : i32
    %c0_i32_0 = arith.constant 0 : i32
    %c0_i32_1 = arith.constant 0 : i32
    return %c0_i32, %c0_i32_0 : i32, i32
  }
  func.func @transform_3(%arg0: i32, %arg1: i32) -> (i32, i32) {
    %c0_i32 = arith.constant 0 : i32
    %c0_i32_0 = arith.constant 0 : i32
    %c0_i32_1 = arith.constant 0 : i32
    return %c0_i32, %c0_i32_0 : i32, i32
  }
  func.func @transform_4(%arg0: i32, %arg1: i32) -> (i32, i32) {
    %c0_i32 = arith.constant 0 : i32
    %c0_i32_0 = arith.constant 0 : i32
    return %arg0, %c0_i32 : i32, i32
  }
}

</mosaic_0001>

<bundles_post_ra>
// kernel: tpu_custom_call.1
= control target key start
LH: loop header
LB: loop body
LE: loop exit
PB: predicated region body
PF: predicated region fallthrough
CT: control target
= control target key end

     0   :  { %9 = vsyncpa [#allocation4], 0  ;;  %s564_s0 = inlined_call_operand.hbm [shape: bf16[16,128], index: 0, kind: input, shape index: {}]   ;;  %s565_s1 = inlined_call_operand.hbm [shape: bf16[128,128], index: 1, kind: input, shape index: {}]   ;;  %s566_s2 = inlined_call_operand.hbm [shape: bf16[128,128], index: 2, kind: input, shape index: {}]   ;;  %s567_s3 = inlined_call_operand.vmem [shape: f32[1,128], index: 3, kind: input, shape index: {}]   ;;  %s568_s4 = inlined_call_operand.hbm [shape: f32[16,128], index: 4, kind: output, shape index: {}]  }
   0x1   :  { %10 = vsyncpa [#allocation7], 0 }
   0x2   :  { %11 = vsyncpa [#allocation5], 0  ;;  %s514_s15 = smov [#allocation6]   ;;  %s515_s17 = smov [#allocation3]  }
   0x3   :  { %s29_s16 = sshll.u32 %s514_s15, 4  ;;  %s17_s18 = sshll.u32 %s515_s17, 4  ;;  %s30_s16 = int_to_ptr.vmem [resolvable:$true] %s29_s16  ;;  %s18_s18 = int_to_ptr.vmem [resolvable:$true] %s17_s18 }
   0x4   :  { %s436_s19 = scalar_lea.vmem %s30_s16, 1024  ;;  %p441_p1 = scmp.lt.s32.totalorder %s30_s16, %s30_s16 }
   0x5   :  { %p437_p0 = scmp.ne.s32.totalorder %s30_s16, %s436_s19  ;;  %p442_p2 = scmp.lt.s32.totalorder %s436_s19, %s436_s19 }
   0x7   :  { %p443_p3 = por %p442_p2, %p441_p1 }
   0x9   :  { %p444_p4 = pnand %p443_p3, %p437_p0 }
   0xb   :  { %447 = shalt.err (!%p444_p4)
}
   0xc   :  { %s516_s20 = smov 64   ;;  %s517_s21 = smov 4  }
   0xd   :  { %35 = dma.hbm_to_vmem [thread:$0]  %s565_s1, 1024, %s30_s16, [#allocation7], %s516_s20, %s516_s20, %s517_s21  }
   0xe   :  { %s456_s24 = scalar_lea.vmem %s18_s18, 128  ;;  %p461_p6 = scmp.lt.s32.totalorder %s18_s18, %s18_s18 }
   0xf   :  { %p457_p5 = scmp.ne.s32.totalorder %s18_s18, %s456_s24  ;;  %p462_p7 = scmp.lt.s32.totalorder %s456_s24, %s456_s24 }
  0x11   :  { %p463_p8 = por %p462_p7, %p461_p6 }
  0x13   :  { %p464_p9 = pnand %p463_p8, %p457_p5 }
  0x15   :  { %467 = shalt.err (!%p464_p9)
}
  0x16   :  { %23 = dma.hbm_to_vmem [thread:$0]  %s564_s0, 128, %s18_s18, [#allocation4], %s516_s20, %s516_s20, %s517_s21  }
  0x17   :  { %s518_s27 = smov [#allocation8]  }
  0x18   :  { %s41_s28 = sshll.u32 %s518_s27, 4  ;;  %s42_s28 = int_to_ptr.vmem [resolvable:$true] %s41_s28 }
  0x19   :  { %s476_s29 = scalar_lea.vmem %s42_s28, 1024  ;;  %p481_p11 = scmp.lt.s32.totalorder %s42_s28, %s42_s28 }
  0x1a   :  { %p477_p10 = scmp.ne.s32.totalorder %s42_s28, %s476_s29  ;;  %p482_p12 = scmp.lt.s32.totalorder %s476_s29, %s476_s29 }
  0x1c   :  { %p483_p13 = por %p482_p12, %p481_p11 }
  0x1e   :  { %p484_p0 = pnand %p483_p13, %p477_p10 }
  0x20   :  { %487 = shalt.err (!%p484_p0)
}
  0x21   :  { %47 = dma.hbm_to_vmem [thread:$0]  %s566_s2, 1024, %s42_s28, [#allocation7], %s516_s20, %s516_s20, %s517_s21  }
  0x22   :  { %508 = dma.done.wait [#allocation4], 128  }
  0x23   :  { %509 = vsyncadd [#allocation4], 4294967168 }
  0x24   :  { %510 = dma.done.wait [#allocation7], 2048  }
  0x25   :  { %511 = vsyncadd [#allocation7], 4294965248  ;;  %v519_v0 = vmov 0.0   ;;  %vm520_vm0 = vmmov 0   ;;  %v411_v1 = vld [vmem:[#allocation6 + $0x38] sm:$0xff]   ;;  %v412_v2 = vld [vmem:[#allocation6 + $0x30] sm:$0xff]  }
  0x26   :  { %361 = vmatprep.subr.bf16.mxu0 %v519_v0  ;;  %377 = vmatprep.mubr.msk.bf16.mxu0 %vm520_vm0, %v519_v0  ;;  %v413_v3 = vld [vmem:[#allocation6 + $0x28] sm:$0xff]   ;;  %v420_v4 = vld [vmem:[#allocation8 + $0x38] sm:$0xff]   ;;  %v414_v5 = vld [vmem:[#allocation6 + $0x20] sm:$0xff]   ;;  %s521_s5 = smov [#allocation9]  }
  0x27   :  { %381 = vmatprep.subr.bf16.mxu1 %v519_v0  ;;  %397 = vmatprep.mubr.msk.bf16.mxu1 %vm520_vm0, %v519_v0  ;;  %v415_v6 = vld [vmem:[#allocation6 + $0x18] sm:$0xff]   ;;  %v421_v7 = vld [vmem:[#allocation8 + $0x30] sm:$0xff]   ;;  %v417_v9 = vld [vmem:[#allocation6 + $0x8] sm:$0xff]   ;;  %s312_s6 = sshll.u32 %s521_s5, 4  ;;  %s313_s6 = int_to_ptr.vmem [resolvable:$true] %s312_s6 }
  0x28   :  { %362 = vmatpush3.bf16.msra.mxu0 %v411_v1  ;;  %382 = vmatpush3.bf16.xpose.msra.mxu1 %v420_v4  ;;  %v416_v8 = vld [vmem:[#allocation6 + $0x10] sm:$0xff]   ;;  %v422_v10 = vld [vmem:[#allocation8 + $0x28] sm:$0xff]   ;;  %v418_v11 = vld [vmem:[#allocation6] sm:$0xff]   ;;  %s488_s7 = scalar_lea.vmem %s313_s6, 256  ;;  %p493_p2 = scmp.lt.s32.totalorder %s313_s6, %s313_s6 }
  0x29   :  { %363 = vmatprep.subr.bf16.mxu0 %v519_v0  ;;  %383 = vmatprep.subr.bf16.mxu1 %v519_v0  ;;  %v419_v12 = vld [vmem:[#allocation3] sm:$0xff]   ;;  %v423_v13 = vld [vmem:[#allocation8 + $0x20] sm:$0xff]   ;;  %v425_v15 = vld [vmem:[#allocation8 + $0x10] sm:$0xff]   ;;  %p489_p1 = scmp.ne.s32.totalorder %s313_s6, %s488_s7  ;;  %p494_p3 = scmp.lt.s32.totalorder %s488_s7, %s488_s7 }
  0x2a   :  { %v424_v14 = vld [vmem:[#allocation8 + $0x18] sm:$0xff]   ;;  %v426_v16 = vld [vmem:[#allocation8 + $0x8] sm:$0xff]   ;;  %v427_v17 = vld [vmem:[#allocation8] sm:$0xff]  }
  0x2b   :  { %v334_v23 = vld [vmem:[%s567_s3] ss:$0 sm:$0xff]  ;;  %p495_p4 = por %p494_p3, %p493_p2 }
  0x2c   :  { %364 = vmatpush3.bf16.msra.mxu0 %v412_v2 }
  0x2d   :  { %365 = vmatprep.subr.bf16.mxu0 %v519_v0  ;;  %p496_p5 = pnand %p495_p4, %p489_p1 }
  0x30   :  { %366 = vmatpush3.bf16.msra.mxu0 %v413_v3  ;;  %384 = vmatpush3.bf16.xpose.msra.mxu1 %v421_v7 }
  0x31   :  { %367 = vmatprep.subr.bf16.mxu0 %v519_v0  ;;  %385 = vmatprep.subr.bf16.mxu1 %v519_v0 }
  0x34   :  { %368 = vmatpush3.bf16.msra.mxu0 %v414_v5 }
  0x35   :  { %369 = vmatprep.subr.bf16.mxu0 %v519_v0 }
  0x38   :  { %370 = vmatpush3.bf16.msra.mxu0 %v415_v6  ;;  %386 = vmatpush3.bf16.xpose.msra.mxu1 %v422_v10 }
  0x39   :  { %371 = vmatprep.subr.bf16.mxu0 %v519_v0  ;;  %387 = vmatprep.subr.bf16.mxu1 %v519_v0 }
  0x3c   :  { %372 = vmatpush3.bf16.msra.mxu0 %v416_v8 }
  0x3d   :  { %373 = vmatprep.subr.bf16.mxu0 %v519_v0 }
  0x40   :  { %374 = vmatpush3.bf16.msra.mxu0 %v417_v9  ;;  %388 = vmatpush3.bf16.xpose.msra.mxu1 %v423_v13 }
  0x41   :  { %375 = vmatprep.subr.bf16.mxu0 %v519_v0  ;;  %389 = vmatprep.subr.bf16.mxu1 %v519_v0 }
  0x44   :  { %376 = vmatpush3.bf16.msra.mxu0 %v418_v11 }
  0x47   :  { %378 = vmatmul.mubr.bf16.vlgmr.msra.gmra.mxu0 %v419_v12 }
  0x48   :  { %390 = vmatpush3.bf16.xpose.msra.mxu1 %v424_v14 }
  0x49   :  { %391 = vmatprep.subr.bf16.mxu1 %v519_v0 }
  0x50   :  { %392 = vmatpush3.bf16.xpose.msra.mxu1 %v425_v15 }
  0x51   :  { %393 = vmatprep.subr.bf16.mxu1 %v519_v0 }
  0x58   :  { %394 = vmatpush3.bf16.xpose.msra.mxu1 %v426_v16 }
  0x59   :  { %395 = vmatprep.subr.bf16.mxu1 %v519_v0 }
  0x60   :  { %396 = vmatpush3.bf16.xpose.msra.mxu1 %v427_v17 }
 0x107   :  { %v174_v18 = vpop.f32.mrf.mxu0 }
 0x109   :  { %v379_v19 = vpop.f32.mrf.mxu0 }
 0x10b   :  { %v177_v20 = vpop.f32.mrf.mxu0 }
 0x10c   :  { %v190_v21 = vpack.c.bf16 %v177_v20, %v174_v18 }
 0x10d   :  { %v380_v22 = vpop.f32.mrf.mxu0 }
 0x10e   :  { %398 = vmatmul.mubr.bf16.vlgmr.msra.gmra.mxu1 %v190_v21 }
 0x1ce   :  { %v296_v24 = vpop.f32.mrf.mxu1 }
 0x1cf   :  { %v297_v25 = vadd.f32 %v334_v23, %v296_v24 }
 0x1d0   :  { %v399_v26 = vpop.f32.mrf.mxu1 }
 0x1d1   :  { %v303_v27 = vmax.f32 %v297_v25, 0.0 }
 0x1d2   :  { %v299_v28 = vpop.f32.mrf.mxu1 }
 0x1d3   :  { %305 = vst [vmem:[#allocation9] sm:$0xff] %v303_v27  ;;  %v300_v29 = vadd.f32 %v334_v23, %v299_v28 }
 0x1d4   :  { %v400_v30 = vpop.f32.mrf.mxu1 }
 0x1d5   :  { %v304_v31 = vmax.f32 %v300_v29, 0.0 }
 0x1d7   :  { %306 = vst [vmem:[#allocation9 + $0x8] sm:$0xff] %v304_v31 }
 0x1d8   :  { %499 = shalt.err (!%p496_p5)
}
 0x1d9   :  { %s522_s3 = smov 128   ;;  %s523_s8 = smov 8  }
 0x1da   :  { %318 = dma.vmem_to_hbm [thread:$0]  %s313_s6, 256, %s568_s4, [#allocation5], %s522_s3, %s522_s3, %s523_s8  }
 0x1db   :  { %512 = dma.done.wait [#allocation5], 256  }
 0x1dc   :  { %513 = vsyncadd [#allocation5], 4294967040 }
 0x1dd   :  { %322 = vsyncpa [#allocation4], 1 }
 0x1de   :  { %323 = vsyncpa [#allocation7], 1 }
 0x1df   :  { %324 = vsyncpa [#allocation5], 1 }

</bundles_post_ra>
